<compile_context>
chip_gen: v5e
topology: v5e:2x2
jax: 0.10.0
libtpu: 0.0.40
codegen_flags: <defaults>
</compile_context>

<pallas_src>
import math
from functools import partial

import jax
import jax.numpy as jnp
from jax.experimental import pallas as pl
from jax.experimental.pallas import tpu as pltpu

_GELU_C = math.sqrt(2.0 / math.pi)


def _new_gelu(x):
    # NewGELU: 0.5*x*(1 + tanh(sqrt(2/pi)*(x + 0.044715*x^3)))
    return 0.5 * x * (1.0 + jnp.tanh(_GELU_C * (x + 0.044715 * x * x * x)))


def _round_up(x, m):
    return ((x + m - 1) // m) * m


def _cdiv(a, b):
    return -(-a // b)


def _vmem_capacity_bytes():
    try:
        return int(pltpu.get_tpu_info().vmem_capacity_bytes)
    except Exception:
        return 64 << 20  # conservative (v7x-sized) fallback


def _device_kind():
    try:
        return jax.devices()[0].device_kind.lower()
    except Exception:
        return ""


def _auto_gelu_dtype(compute_dtype):
    # bf16 VPU/EUP exists on v6e/v7x (halves GELU polynomial+tanh cycles); v5e
    # and older have no bf16 vector units, so keep the GELU in f32 there.
    if compute_dtype == jnp.bfloat16:
        kind = _device_kind()
        if ("v6" in kind) or ("v7" in kind):
            return jnp.bfloat16
    return jnp.float32


# ----------------------------------------------------------------------------- kernels
def ffn_resident_kernel(x_ref, w1_ref, b1_ref, w2_ref, b2_ref, o_ref, *, gelu_dtype):
    """Weights fully VMEM-resident. Grid = (token_tiles,)."""
    xc = x_ref[...].astype(w1_ref.dtype)
    h = jnp.dot(xc, w1_ref[...], preferred_element_type=jnp.float32) + b1_ref[...]
    g = _new_gelu(h.astype(gelu_dtype))
    y = jnp.dot(g.astype(w2_ref.dtype), w2_ref[...], preferred_element_type=jnp.float32)
    o_ref[...] = (y + b2_ref[...]).astype(o_ref.dtype)


def ffn_tiled_kernel(x_ref, w1_ref, b1_ref, w2_ref, b2_ref, o_ref,
                     xc_ref, acc_ref, *, gelu_dtype):
    """Fallback: dim_ff tiled as a trailing 'arbitrary' reduction axis.
    Grid = (token_tiles, dim_ff_tiles).  xc_ref caches the cast x tile; acc_ref
    is the f32 accumulator."""
    k = pl.program_id(1)

    @pl.when(k == 0)
    def _():
        # Cast x once per token tile (x block is resident across the k loop).
        xc_ref[...] = x_ref[...].astype(xc_ref.dtype)

    h = jnp.dot(xc_ref[...], w1_ref[...], preferred_element_type=jnp.float32) + b1_ref[...]
    g = _new_gelu(h.astype(gelu_dtype))
    part = jnp.dot(g.astype(w2_ref.dtype), w2_ref[...], preferred_element_type=jnp.float32)

    @pl.when(k == 0)
    def _():
        acc_ref[...] = part          # no explicit zero-init pass

    @pl.when(k > 0)
    def _():
        acc_ref[...] += part

    @pl.when(k == pl.num_programs(1) - 1)
    def _():
        o_ref[...] = (acc_ref[...] + b2_ref[...]).astype(o_ref.dtype)


# ----------------------------------------------------------------------------- params
def prepare_ffn_params(w1, b1, w2, b2, *, compute_dtype=jnp.bfloat16, tf=512):
    """One-time parameter prep (at setup, NOT per forward call):
    [in, out] layout, cast for the MXU, dim_ff padded to the fallback tile size.
    w1: [n_embd, dim_ff], b1: [dim_ff], w2: [dim_ff, n_embd], b2: [n_embd]."""
    n_embd, dim_ff = w1.shape
    tf_eff = dim_ff if dim_ff <= tf else tf
    dim_ff_p = _round_up(dim_ff, tf_eff)
    if dim_ff_p != dim_ff:
        # Zero-padded hidden units contribute gelu(0+b?)·0 = 0 through zero W2 rows.
        w1 = jnp.pad(w1, ((0, 0), (0, dim_ff_p - dim_ff)))
        b1 = jnp.pad(b1, (0, dim_ff_p - dim_ff))
        w2 = jnp.pad(w2, ((0, dim_ff_p - dim_ff), (0, 0)))
    return dict(
        w1=w1.astype(compute_dtype),
        b1=b1.reshape(1, dim_ff_p).astype(jnp.float32),   # biases stay f32
        w2=w2.astype(compute_dtype),
        b2=b2.reshape(1, n_embd).astype(jnp.float32),
        tf=tf_eff,
        n_embd=n_embd,
        dim_ff=dim_ff,
    )


# ----------------------------------------------------------------------------- wrapper
def position_wise_ffn(x, params, *, tm=512, force_tiled=False):
    """x: [B, S, n_embd]; params from prepare_ffn_params. Returns [B, S, n_embd]."""
    B, S, n_embd = x.shape
    assert n_embd == params["n_embd"]
    w1, b1, w2, b2 = params["w1"], params["b1"], params["w2"], params["b2"]
    tf = params["tf"]
    dim_ff = params["dim_ff"]
    dim_ff_p = w1.shape[1]

    compute_dtype = w1.dtype
    gelu_dtype = _auto_gelu_dtype(compute_dtype)

    tokens = B * S
    x2 = x.reshape(tokens, n_embd)

    # Only pad when the token count is not sublane (8) aligned (rare).  Otherwise
    # rely on Pallas' ragged-last-block masking: no whole-array HBM pad/slice.
    tokens_p = _round_up(tokens, 8)
    if tokens_p != tokens:
        x2 = jnp.pad(x2, ((0, tokens_p - tokens), (0, 0)))

    x_bytes = x2.dtype.itemsize
    c_bytes = jnp.dtype(compute_dtype).itemsize
    g_bytes = jnp.dtype(gelu_dtype).itemsize
    w_bytes = 2 * n_embd * dim_ff_p * c_bytes            # W1 + W2

    vmem_cap = _vmem_capacity_bytes()                     # 64 MiB v7x, 128 MiB v5e/v6e
    vmem_budget = int(0.80 * vmem_cap)

    # Token tile: large, but >= 2 tiles when possible so megacore (v7x, 2 TCs)
    # has work on both cores, then shrunk until the VMEM footprint fits.
    tm_eff = min(_round_up(tm, 8), tokens_p)
    if _cdiv(tokens_p, tm_eff) < 2 and tokens_p >= 16:
        tm_eff = _round_up(_cdiv(tokens_p, 2), 8)

    def resident_vmem(tm_):
        return (2 * tm_ * n_embd * x_bytes                # x tiles (double-buffered)
                + 2 * tm_ * n_embd * x_bytes              # out tiles
                + 2 * w_bytes                             # W1+W2 (assume 2 buffers)
                + 4 * (dim_ff_p + n_embd) * 4             # biases
                + tm_ * dim_ff_p * (4 + g_bytes))         # h (f32) + g intermediates

    def tiled_vmem(tm_):
        return (2 * tm_ * n_embd * x_bytes                # x tiles
                + 2 * tm_ * n_embd * x_bytes              # out tiles
                + tm_ * n_embd * (c_bytes + 4)            # xc cache + f32 acc scratch
                + 4 * n_embd * tf * c_bytes               # W1/W2 tiles (double-buffered)
                + 4 * (tf + n_embd) * 4                   # bias tiles
                + tm_ * tf * (4 + g_bytes))               # h/g intermediates

    use_resident = not force_tiled
    if use_resident:
        while resident_vmem(tm_eff) > vmem_budget and tm_eff > 128:
            tm_eff = _round_up(tm_eff // 2, 8)
        if resident_vmem(tm_eff) > vmem_budget:
            use_resident = False
            tm_eff = min(_round_up(tm, 8), tokens_p)
            if _cdiv(tokens_p, tm_eff) < 2 and tokens_p >= 16:
                tm_eff = _round_up(_cdiv(tokens_p, 2), 8)
    if not use_resident:
        while tiled_vmem(tm_eff) > vmem_budget and tm_eff > 128:
            tm_eff = _round_up(tm_eff // 2, 8)

    n_tok_tiles = _cdiv(tokens_p, tm_eff)

    if use_resident:
        vmem_est = resident_vmem(tm_eff)
        vmem_limit = int(min(0.92 * vmem_cap, max(vmem_est + (4 << 20), 32 << 20)))
        cost = pl.CostEstimate(
            flops=4 * tokens * n_embd * dim_ff,
            transcendentals=tokens * dim_ff,
            bytes_accessed=(2 * tokens * n_embd * x_bytes   # x in + out
                            + w_bytes                       # weights DMA'd once
                            + (dim_ff_p + n_embd) * 4),     # biases
        )
        out = pl.pallas_call(
            partial(ffn_resident_kernel, gelu_dtype=gelu_dtype),
            out_shape=jax.ShapeDtypeStruct((tokens_p, n_embd), x.dtype),
            grid_spec=pltpu.PrefetchScalarGridSpec(
                num_scalar_prefetch=0,
                grid=(n_tok_tiles,),
                in_specs=[
                    pl.BlockSpec((tm_eff, n_embd), lambda i: (i, 0)),   # x tile
                    pl.BlockSpec((n_embd, dim_ff_p), lambda i: (0, 0)), # W1 (resident)
                    pl.BlockSpec((1, dim_ff_p), lambda i: (0, 0)),      # b1
                    pl.BlockSpec((dim_ff_p, n_embd), lambda i: (0, 0)), # W2 (resident)
                    pl.BlockSpec((1, n_embd), lambda i: (0, 0)),        # b2
                ],
                out_specs=pl.BlockSpec((tm_eff, n_embd), lambda i: (i, 0)),
            ),
            compiler_params=pltpu.CompilerParams(
                dimension_semantics=("parallel",),
                vmem_limit_bytes=vmem_limit,
            ),
            cost_estimate=cost,
        )(x2, w1, b1, w2, b2)
    else:
        n_k = dim_ff_p // tf
        vmem_est = tiled_vmem(tm_eff)
        vmem_limit = int(min(0.92 * vmem_cap, max(vmem_est + (4 << 20), 32 << 20)))
        cost = pl.CostEstimate(
            flops=4 * tokens * n_embd * dim_ff,
            transcendentals=tokens * dim_ff,
            bytes_accessed=(2 * tokens * n_embd * x_bytes
                            + n_tok_tiles * w_bytes          # weights re-streamed / tile
                            + (dim_ff_p + n_embd) * 4),
        )
        out = pl.pallas_call(
            partial(ffn_tiled_kernel, gelu_dtype=gelu_dtype),
            out_shape=jax.ShapeDtypeStruct((tokens_p, n_embd), x.dtype),
            grid_spec=pltpu.PrefetchScalarGridSpec(
                num_scalar_prefetch=0,
                grid=(n_tok_tiles, n_k),                     # reduction axis last
                in_specs=[
                    pl.BlockSpec((tm_eff, n_embd), lambda i, k: (i, 0)),  # x tile
                    pl.BlockSpec((n_embd, tf), lambda i, k: (0, k)),      # W1 tile
                    pl.BlockSpec((1, tf), lambda i, k: (0, k)),           # b1 tile
                    pl.BlockSpec((tf, n_embd), lambda i, k: (k, 0)),      # W2 tile
                    pl.BlockSpec((1, n_embd), lambda i, k: (0, 0)),       # b2
                ],
                out_specs=pl.BlockSpec((tm_eff, n_embd), lambda i, k: (i, 0)),
                scratch_shapes=[
                    pltpu.VMEM((tm_eff, n_embd), compute_dtype),  # cached cast of x
                    pltpu.VMEM((tm_eff, n_embd), jnp.float32),    # f32 accumulator
                ],
            ),
            compiler_params=pltpu.CompilerParams(
                dimension_semantics=("parallel", "arbitrary"),
                vmem_limit_bytes=vmem_limit,
            ),
            cost_estimate=cost,
        )(x2, w1, b1, w2, b2)

    if tokens_p != tokens:
        out = out[:tokens]
    return out.reshape(B, S, n_embd)


# ----------------------------------------------------------------------------- reference & tests
def _reference(x, w1, b1, w2, b2):
    h = jnp.einsum("bse,ef->bsf", x, w1) + b1
    g = _new_gelu(h)
    return jnp.einsum("bsf,fe->bse", g, w2) + b2


def _make_params(key, n_embd, dim_ff):
    k1, kb1, k2, kb2 = jax.random.split(key, 4)
    lim1 = 1.0 / math.sqrt(n_embd)
    lim2 = 1.0 / math.sqrt(dim_ff)
    w1 = jax.random.uniform(k1, (n_embd, dim_ff), jnp.float32, -lim1, lim1)
    b1 = jax.random.uniform(kb1, (dim_ff,), jnp.float32, -lim1, lim1)
    w2 = jax.random.uniform(k2, (dim_ff, n_embd), jnp.float32, -lim2, lim2)
    b2 = jax.random.uniform(kb2, (n_embd,), jnp.float32, -lim2, lim2)
    return w1, b1, w2, b2


if __name__ == "__main__":
    key = jax.random.PRNGKey(0)
    k_small, k_big = jax.random.split(key, 2)

    # --- Test 1/2: small BertConfig-like shapes (batch=2, seq=8, n_embd=32, dim_ff=128)
    B, S, n_embd, dim_ff = 2, 8, 32, 128
    kx, kp = jax.random.split(k_small, 2)
    x = jax.random.normal(kx, (B, S, n_embd), dtype=jnp.float32)
    w1, b1, w2, b2 = _make_params(kp, n_embd, dim_ff)
    ref = _reference(x, w1, b1, w2, b2)

    # f32 compute path (resident weights): must match reference tightly.
    p_f32 = prepare_ffn_params(w1, b1, w2, b2, compute_dtype=jnp.float32)
    out_f32 = jax.block_until_ready(position_wise_ffn(x, p_f32))
    assert out_f32.shape == (B, S, n_embd)
    assert jnp.allclose(out_f32, ref, atol=1e-5, rtol=1e-5)

    # bf16 MXU inputs (f32 accumulation): loosened tolerance per bf16 precision.
    p_bf16 = prepare_ffn_params(w1, b1, w2, b2, compute_dtype=jnp.bfloat16)
    out_bf16 = jax.block_until_ready(position_wise_ffn(x, p_bf16))
    assert jnp.allclose(out_bf16, ref, atol=5e-2, rtol=5e-2)

    # --- Test 3: larger shapes, multi-tile token grid with a ragged last tile
    # (tokens=400, tm=256 -> grid of 2 with masked tail; no wrapper pad).
    B2, S2, E2, F2 = 4, 100, 128, 1024
    kx2, kp2 = jax.random.split(k_big, 2)
    x2 = jax.random.normal(kx2, (B2, S2, E2), dtype=jnp.float32)
    w1b, b1b, w2b, b2b = _make_params(kp2, E2, F2)
    ref2 = _reference(x2, w1b, b1b, w2b, b2b)
    p2 = prepare_ffn_params(w1b, b1b, w2b, b2b, compute_dtype=jnp.bfloat16, tf=512)

    # 3a: resident-weight path (default).
    out2 = jax.block_until_ready(position_wise_ffn(x2, p2, tm=256))
    assert out2.shape == (B2, S2, E2)
    assert jnp.allclose(out2, ref2, atol=5e-2, rtol=5e-2)

    # 3b: forced tf-tiled fallback path (used when weights don't fit VMEM).
    out2t = jax.block_until_ready(position_wise_ffn(x2, p2, tm=256, force_tiled=True))
    assert jnp.allclose(out2t, ref2, atol=5e-2, rtol=5e-2)

    print("KERNEL_OK")
</pallas_src>

<mosaic_0001>
module attributes {stable_mosaic.version = 11 : i64} {
  func.func @ffn_resident_kernel(%arg0: i32, %arg1: memref<8x32xf32, #tpu.memory_space<vmem>>, %arg2: memref<32x128xf32, #tpu.memory_space<vmem>>, %arg3: memref<1x128xf32, #tpu.memory_space<vmem>>, %arg4: memref<128x32xf32, #tpu.memory_space<vmem>>, %arg5: memref<1x32xf32, #tpu.memory_space<vmem>>, %arg6: memref<8x32xf32, #tpu.memory_space<vmem>>) attributes {dimension_semantics = [#tpu.dimension_semantics<parallel>], iteration_bounds = array<i64: 2>, scalar_prefetch = 0 : i64, scratch_operands = 0 : i64, tpu.core_type = #tpu.core_type<tc>, window_params = [{transform_indices = @transform_0, window_bounds = array<i64: 8, 32>}, {pipeline_mode = #tpu.pipeline_mode<synchronous>, transform_indices = @transform_1, window_bounds = array<i64: 32, 128>}, {pipeline_mode = #tpu.pipeline_mode<synchronous>, transform_indices = @transform_2, window_bounds = array<i64: 1, 128>}, {pipeline_mode = #tpu.pipeline_mode<synchronous>, transform_indices = @transform_3, window_bounds = array<i64: 128, 32>}, {pipeline_mode = #tpu.pipeline_mode<synchronous>, transform_indices = @transform_4, window_bounds = array<i64: 1, 32>}, {transform_indices = @transform_5, window_bounds = array<i64: 8, 32>}]} {
    %c0 = arith.constant 0 : index
    %c0_0 = arith.constant 0 : index
    %0 = vector.load %arg1[%c0, %c0_0] : memref<8x32xf32, #tpu.memory_space<vmem>>, vector<8x32xf32>
    %c0_1 = arith.constant 0 : index
    %c0_2 = arith.constant 0 : index
    %1 = vector.load %arg2[%c0_1, %c0_2] : memref<32x128xf32, #tpu.memory_space<vmem>>, vector<32x128xf32>
    %cst = arith.constant dense<0.000000e+00> : vector<8x128xf32>
    %2 = tpu.matmul %0, %1, %cst {dimension_numbers = #tpu.dot_dimension_numbers<[1], [0], [0], [1], [0, 0, 1, 1], [], []>} : vector<8x32xf32>, vector<32x128xf32>, vector<8x128xf32> -> vector<8x128xf32>
    %c0_3 = arith.constant 0 : index
    %c0_4 = arith.constant 0 : index
    %3 = vector.load %arg3[%c0_3, %c0_4] : memref<1x128xf32, #tpu.memory_space<vmem>>, vector<1x128xf32>
    %4 = vector.broadcast %3 : vector<1x128xf32> to vector<8x128xf32>
    %5 = arith.addf %2, %4 : vector<8x128xf32>
    %cst_5 = arith.constant 5.000000e-01 : f32
    %6 = vector.broadcast %cst_5 : f32 to vector<8x128xf32>
    %7 = arith.mulf %6, %5 : vector<8x128xf32>
    %cst_6 = arith.constant 4.471500e-02 : f32
    %8 = vector.broadcast %cst_6 : f32 to vector<8x128xf32>
    %9 = arith.mulf %8, %5 : vector<8x128xf32>
    %10 = arith.mulf %9, %5 : vector<8x128xf32>
    %11 = arith.mulf %10, %5 : vector<8x128xf32>
    %12 = arith.addf %5, %11 : vector<8x128xf32>
    %cst_7 = arith.constant 0.797884583 : f32
    %13 = vector.broadcast %cst_7 : f32 to vector<8x128xf32>
    %14 = arith.mulf %13, %12 : vector<8x128xf32>
    %15 = math.tanh %14 : vector<8x128xf32>
    %cst_8 = arith.constant 1.000000e+00 : f32
    %16 = vector.broadcast %cst_8 : f32 to vector<8x128xf32>
    %17 = arith.addf %16, %15 : vector<8x128xf32>
    %18 = arith.mulf %7, %17 : vector<8x128xf32>
    %c0_9 = arith.constant 0 : index
    %c0_10 = arith.constant 0 : index
    %19 = vector.load %arg4[%c0_9, %c0_10] : memref<128x32xf32, #tpu.memory_space<vmem>>, vector<128x32xf32>
    %cst_11 = arith.constant dense<0.000000e+00> : vector<8x32xf32>
    %20 = tpu.matmul %18, %19, %cst_11 {dimension_numbers = #tpu.dot_dimension_numbers<[1], [0], [0], [1], [0, 0, 1, 1], [], []>} : vector<8x128xf32>, vector<128x32xf32>, vector<8x32xf32> -> vector<8x32xf32>
    %c0_12 = arith.constant 0 : index
    %c0_13 = arith.constant 0 : index
    %21 = vector.load %arg5[%c0_12, %c0_13] : memref<1x32xf32, #tpu.memory_space<vmem>>, vector<1x32xf32>
    %22 = vector.broadcast %21 : vector<1x32xf32> to vector<8x32xf32>
    %23 = arith.addf %20, %22 : vector<8x32xf32>
    %c0_14 = arith.constant 0 : index
    %c0_15 = arith.constant 0 : index
    %24 = vector.load %arg6[%c0_14, %c0_15] : memref<8x32xf32, #tpu.memory_space<vmem>>, vector<8x32xf32>
    tpu.vector_store %arg6[%c0_14, %c0_15], %23 {strides = array<i32>} : memref<8x32xf32, #tpu.memory_space<vmem>>, vector<8x32xf32>,
    return
  }
  func.func @transform_0(%arg0: i32) -> (i32, i32) {
    %c0_i32 = arith.constant 0 : i32
    %c0_i32_0 = arith.constant 0 : i32
    return %arg0, %c0_i32 : i32, i32
  }
  func.func @transform_1(%arg0: i32) -> (i32, i32) {
    %c0_i32 = arith.constant 0 : i32
    %c0_i32_0 = arith.constant 0 : i32
    %c0_i32_1 = arith.constant 0 : i32
    return %c0_i32, %c0_i32_0 : i32, i32
  }
  func.func @transform_2(%arg0: i32) -> (i32, i32) {
    %c0_i32 = arith.constant 0 : i32
    %c0_i32_0 = arith.constant 0 : i32
    %c0_i32_1 = arith.constant 0 : i32
    return %c0_i32, %c0_i32_0 : i32, i32
  }
  func.func @transform_3(%arg0: i32) -> (i32, i32) {
    %c0_i32 = arith.constant 0 : i32
    %c0_i32_0 = arith.constant 0 : i32
    %c0_i32_1 = arith.constant 0 : i32
    return %c0_i32, %c0_i32_0 : i32, i32
  }
  func.func @transform_4(%arg0: i32) -> (i32, i32) {
    %c0_i32 = arith.constant 0 : i32
    %c0_i32_0 = arith.constant 0 : i32
    %c0_i32_1 = arith.constant 0 : i32
    return %c0_i32, %c0_i32_0 : i32, i32
  }
  func.func @transform_5(%arg0: i32) -> (i32, i32) {
    %c0_i32 = arith.constant 0 : i32
    %c0_i32_0 = arith.constant 0 : i32
    return %arg0, %c0_i32 : i32, i32
  }
}

</mosaic_0001>

<bundles_post_ra>
// kernel: tpu_custom_call.1
= control target key start
LH: loop header
LB: loop body
LE: loop exit
PB: predicated region body
PF: predicated region fallthrough
CT: control target
= control target key end

     0   :  { %10 = vsyncpa [#allocation3], 0  ;;  %s679_s0 = inlined_call_operand.vmem [shape: f32[16,32], index: 0, kind: input, shape index: {}]   ;;  %s680_s1 = inlined_call_operand.vmem [shape: f32[32,128], index: 1, kind: input, shape index: {}]   ;;  %s681_s2 = inlined_call_operand.vmem [shape: f32[1,128], index: 2, kind: input, shape index: {}]   ;;  %s682_s3 = inlined_call_operand.vmem [shape: f32[128,32], index: 3, kind: input, shape index: {}]   ;;  %s683_s4 = inlined_call_operand.vmem [shape: f32[1,32], index: 4, kind: input, shape index: {}]   ;;  %s684_s5 = inlined_call_operand.hbm [shape: f32[16,32], index: 5, kind: output, shape index: {}]  }
   0x1   :  { %12 = vsyncpa [#allocation3 + $0x1], 0  ;;  %s526_s18 = smov 0   ;;  %s528_s19 = smov 0  }
   0x2   :  { %s530_s20 = smov 0   ;;  %s532_s21 = smov 0  }
   0x3 LB: > { %s547_s22 = sadd.s32 4294967295, %s494_s21   ;;  %s378_s23 = sadd.s32 4294967294, %s494_s21   ;;  %s494_s21 = sphi %s532_s21, %s690_s21   ;;  %s490_s20 = sphi %s530_s20, %s689_s20   ;;  %s486_s19 = sphi %s528_s19, %s688_s19   ;;  %s482_s18 = sphi %s526_s18, %s687_s18  }
   0x4   : > { %s551_s24 = sadd.s32 1, %s494_s21   ;;  %s135_s25 = sadd.s32 1, %s490_s20 }
   0x5   : > { %s132_s26 = ssub.s32 %s494_s21, %s551_s24  ;;  %p145_p0 = scmp.ne.s32.totalorder %s490_s20, %s486_s19 }
   0x6   : > { %p133_p1 = scmp.eq.s32.totalorder %s132_s26, 0  ;;  %p146_p2 = scmp.eq.s32.totalorder %s547_s22, 1 }
   0x7   : > { %p151_p3 = scmp.ne.s32.totalorder %s486_s19, %s482_s18  ;;  %p152_p4 = scmp.eq.s32.totalorder %s378_s23, 1 }
   0x8   : > { %s562_s27 = scalar_select %p133_p1, %s490_s20, %s135_s25  }
   0x9   : > { %p564_p5 = por %p146_p2, %p145_p0  ;;  %p568_p6 = por %p152_p4, %p151_p3 }
   0xa   : > { %p381_p7 = scmp.ge.s32.totalorder %s494_s21, 1  ;;  %p189_p8 = scmp.lt.s32.totalorder %s494_s21, 3 }
   0xc   : > { %p190_p9 = pnand %p381_p7, %p189_p8 }
   0xd   : > { %p216_p10 = scmp.lt.s32.totalorder (!%p190_p9), %s547_s22, 1  ;;  %s386_s6 = sshll.u32 (!%p190_p9), %s547_s22, 3 }
   0xe   : > { %193 = sbr.rel (%p190_p9) target bundleno = 307 (0x133), region = 40  ;;  %s314_s9 = scalar_lea.hbm (!%p190_p9), %s684_s5, %s386_s6 }
   0xf   : > { %s318_s14 = sshll.u32 (!%p190_p9), %s314_s9, 4  ;;  %s452_s25 = scalar_lea.hbm (!%p190_p9), %s684_s5, 16  ;;  %s319_s14 = int_to_ptr.hbm [resolvable:$true] %s318_s14 }
  0x13   : > { %v224_v0 = vld [vmem:[%s680_s1 + $0x18] sm:$0xff]  ;;  %v223_v1 = vld [vmem:[%s680_s1 + $0x10] sm:$0xff]  ;;  %v222_v4 = vld [vmem:[%s680_s1 + $0x8] sm:$0xff]  ;;  %s217_s15 = scalar_select %p216_p10, %s547_s22, 1  ;;  %vm229_vm0 = vcmask 261120  }
  0x14   : > { %245 = vmatpush.msra.mxu0 %v224_v0  ;;  %v277_v2 = vld [vmem:[%s682_s3 + $0x78] sm:$0xff]  ;;  %v276_v3 = vld [vmem:[%s682_s3 + $0x70] sm:$0xff]  ;;  %v275_v5 = vld [vmem:[%s682_s3 + $0x68] sm:$0xff]  ;;  %s446_s22 = sshra.s32 %s319_s14, 4  ;;  %s447_s22 = int_to_ptr.hbm [resolvable:$true] %s446_s22 }
  0x15   : > { %282 = vmatpush.msra.mxu1 %v277_v2  ;;  %v221_v6 = vld [vmem:[%s680_s1] sm:$0xff]  ;;  %s383_s26 = sshll.u32 %s217_s15, 3  ;;  %v273_v9 = vld [vmem:[%s682_s3 + $0x58] sm:$0xff]  ;;  %v272_v10 = vld [vmem:[%s682_s3 + $0x50] sm:$0xff]  ;;  %s448_s16 = scalar_lea.hbm %s447_s22, 8 }
  0x16   : > { %246 = vmatpush.msra.mxu0 %v223_v1  ;;  %s219_s7 = scalar_lea.vmem %s679_s0, %s383_s26  ;;  %v274_v7 = vld [vmem:[%s682_s3 + $0x60] sm:$0xff]  ;;  %v271_v11 = vld [vmem:[%s682_s3 + $0x48] sm:$0xff]  ;;  %v269_v13 = vld [vmem:[%s682_s3 + $0x38] sm:$0xff]  ;;  %s213_s26 = sand.u32 1, %s486_s19  }
  0x17   : > { %283 = vmatpush.msra.mxu1 %v276_v3  ;;  %v220_v8 = vld [vmem:[%s219_s7] sm:$0xff]  ;;  %v268_v14 = vld [vmem:[%s682_s3 + $0x30] sm:$0xff]  ;;  %v267_v15 = vld [vmem:[%s682_s3 + $0x28] sm:$0xff]  ;;  %s382_s30 = sshll.u32 %s213_s26, 3  ;;  %s304_s15 = scalar_lea.sflag [#allocation3], %s213_s26 }
  0x18   : > { %247 = vmatpush.msra.mxu0 %v222_v4  ;;  %v270_v12 = vld [vmem:[%s682_s3 + $0x40] sm:$0xff]  ;;  %v265_v17 = vld [vmem:[%s682_s3 + $0x18] sm:$0xff]  ;;  %v264_v18 = vld [vmem:[%s682_s3 + $0x10] sm:$0xff]  ;;  %s215_s12 = scalar_lea.vmem [#allocation2], %s382_s30  ;;  %p449_p11 = scmp.ne.s32.totalorder %s447_s22, %s448_s16 }
  0x19   : > { %284 = vmatpush.msra.mxu1 %v275_v5  ;;  %v266_v16 = vld [vmem:[%s682_s3 + $0x20] sm:$0xff]  ;;  %v263_v19 = vld [vmem:[%s682_s3 + $0x8] sm:$0xff]  ;;  %s316_s13 = sshll.u32 %s215_s12, 4  ;;  %p453_p0 = scmp.lt.s32.totalorder %s447_s22, %s684_s5  ;;  %s317_s13 = int_to_ptr.vmem [resolvable:$true] %s316_s13 }
  0x1a   : > { %248 = vmatpush.msra.mxu0 %v221_v6  ;;  %v262_v20 = vld [vmem:[%s682_s3] sm:$0xff]  ;;  %p450_p12 = pnand %p449_p11, %p564_p5  ;;  %p454_p1 = scmp.lt.s32.totalorder %s452_s25, %s448_s16 }
  0x1b   : > { %384 = vmatmul.msk.f32.vlgmr.msra.gmra.mxu0 %vm229_vm0, %v220_v8  ;;  %285 = vmatpush.msra.mxu1 %v274_v7  ;;  %v428_v21 = vld [vmem:[%s681_s2] ss:$0 sm:$0xff] }
  0x1c   : > { %v429_v33 = vld [vmem:[%s683_s4] ss:$0 sm:$0xff]  ;;  %p451_p13 = pneg %p450_p12  ;;  %p455_p2 = por %p454_p1, %p453_p0 }
  0x1d   : > { %286 = vmatpush.msra.mxu1 %v273_v9 }
  0x1e   : > { %p456_p3 = pnand %p455_p2, %p451_p13 }
  0x1f   : > { %287 = vmatpush.msra.mxu1 %v272_v10 }
  0x21   : > { %288 = vmatpush.msra.mxu1 %v271_v11 }
  0x23   : > { %289 = vmatpush.msra.mxu1 %v270_v12 }
  0x25   : > { %290 = vmatpush.msra.mxu1 %v269_v13 }
  0x27   : > { %291 = vmatpush.msra.mxu1 %v268_v14 }
  0x29   : > { %292 = vmatpush.msra.mxu1 %v267_v15 }
  0x2b   : > { %293 = vmatpush.msra.mxu1 %v266_v16 }
  0x2d   : > { %294 = vmatpush.msra.mxu1 %v265_v17 }
  0x2f   : > { %295 = vmatpush.msra.mxu1 %v264_v18 }
  0x31   : > { %296 = vmatpush.msra.mxu1 %v263_v19 }
  0x33   : > { %297 = vmatpush.msra.mxu1 %v262_v20 }
  0x98   : > { %v250_v22 = vpop.f32.mrf.mxu0 }
  0x99   : > { %v251_v23 = vadd.f32 %v428_v21, %v250_v22 }
  0x9b   : > { %v254_v24 = vmul.f32 0.044715, %v251_v23  ;;  %v253_v30 = vmul.f32 0.5, %v251_v23 }
  0x9d   : > { %v255_v25 = vmul.f32 %v254_v24, %v251_v23 }
  0x9f   : > { %v256_v26 = vmul.f32 %v255_v25, %v251_v23 }
  0xa1   : > { %v257_v27 = vadd.f32 %v256_v26, %v251_v23 }
  0xa3   : > { %v258_v28 = vmul.f32 0.7978846, %v257_v27 }
  0xa5   : > { %430 = vtanh.f32 %v258_v28 }
  0xab   : > { %v431_v29 = vpop.eup %430 }
  0xac   : > { %v260_v31 = vadd.f32 1.0, %v431_v29 }
  0xae   : > { %v261_v32 = vmul.f32 %v260_v31, %v253_v30 }
  0xb0   : > { %298 = vmatmul.f32.vlgmr.msra.gmra.mxu1 %v261_v32 }
 0x12d   : > { %v299_v34 = vpop.f32.mrf.mxu1 }
 0x12e   : > { %v300_v35 = vadd.f32 %v429_v33, %v299_v34 }
 0x130   : > { %302 = vst.msk [vmem:[%s215_s12] sm:$0xff] %vm229_vm0, %v300_v35 }
 0x131   : > { %459 = shalt.err (!%p456_p3)
}
 0x132   : > { %389 = dma.vmem_to_hbm [thread:$0]  (%p564_p5), %s317_s13, 128, %s319_s14, %s304_s15  }
 0x133 PF: > { %p395_p4 = scmp.ge.s32.totalorder %s494_s21, 2  ;;  %s330_s26 = sand.u32 1, %s482_s18  }
 0x134   : > { %s331_s7 = scalar_lea.sflag [#allocation3], %s330_s26 }
 0x135   : > { %p392_p7 = pnand %p395_p4, %p568_p6 }
 0x137   : > { %p393_p8 = pneg %p392_p7 }
 0x139   : > { %477 = dma.done.wait (%p393_p8), %s331_s7, 128  }
 0x13a   : > { %479 = vsyncadd (%p393_p8), %s331_s7, 4294967168  ;;  %p15_p9 = scmp.ge.s32.totalorder %s551_s24, 4   ;;  %s687_s18 = smov %s486_s19 }
 0x13b   : > { %s688_s19 = smov %s490_s20  ;;  %s689_s20 = smov %s562_s27 }
 0x13c   : > { %s690_s21 = smov %s551_s24  ;;  %17 = sbr.rel (!%p15_p9) target bundleno = 3 (0x3), region = 75 }
 0x141   :  { %337 = vsyncpa [#allocation3], 1 }
 0x142   :  { %339 = vsyncpa [#allocation3 + $0x1], 1 }

</bundles_post_ra>
